<compile_context>
chip_gen: v7x
topology: tpu7x:2x2x1
jax: 0.10.0
libtpu: 0.0.40
codegen_flags: <defaults>
</compile_context>

<pallas_src>
import functools
import math

import jax
import jax.numpy as jnp
from jax import lax
from jax.experimental import pallas as pl
from jax.experimental.pallas import tpu as pltpu


def _round_up(x, m):
    return ((x + m - 1) // m) * m


def _gelu_exact(x):
    # Exact (erf-based) GELU, matching torch.nn.functional.gelu default.
    return 0.5 * x * (1.0 + lax.erf(x * (1.0 / math.sqrt(2.0))))


# ---------------------------------------------------------------------------
# Pass 1: h = LayerNorm(gelu(x @ W1 + b1))   (one row-tile per grid step)
# ---------------------------------------------------------------------------
def transform_kernel(x_ref, w1_ref, b1_ref, gamma_ref, beta_ref, h_ref, *, eps):
    # bf16 operands on the MXU, f32 accumulation.
    h = jnp.dot(x_ref[...], w1_ref[...], preferred_element_type=jnp.float32)
    h = h + b1_ref[...]
    h = _gelu_exact(h)
    # LayerNorm over the hidden (last) axis, in f32.
    mean = jnp.mean(h, axis=-1, keepdims=True)
    var = jnp.mean(jnp.square(h - mean), axis=-1, keepdims=True)
    h = (h - mean) * lax.rsqrt(var + eps)
    h = h * gamma_ref[...] + beta_ref[...]
    h_ref[...] = h.astype(h_ref.dtype)


# ---------------------------------------------------------------------------
# Pass 2: scores = h @ W2 + b2   (vocab axis outer, row axis inner)
# ---------------------------------------------------------------------------
def decoder_kernel(h_ref, w2_ref, b2_ref, out_ref):
    scores = jnp.dot(h_ref[...], w2_ref[...], preferred_element_type=jnp.float32)
    out_ref[...] = (scores + b2_ref[...]).astype(out_ref.dtype)


def bert_only_mlm_head(sequence_output, params, *, eps=1e-12,
                       tile_m=1024, tile_v=2048,
                       compute_dtype=jnp.bfloat16, logits_dtype=None,
                       vmem_limit_bytes=48 * 1024 * 1024):
    """sequence_output: [B, S, H] -> prediction scores [B, S, V]."""
    B, S, H = sequence_output.shape
    V = params["decoder_w"].shape[1]
    M = B * S
    out_dtype = sequence_output.dtype if logits_dtype is None else logits_dtype

    # Clamp tiles to the (padded) problem size; 16-row granule keeps bf16
    # sublane packing happy for tiny batches.
    tile_m = min(tile_m, _round_up(M, 16))
    tile_v = min(tile_v, _round_up(V, 128))
    M_pad = _round_up(M, tile_m)
    V_pad = _round_up(V, tile_v)

    x = sequence_output.reshape(M, H).astype(compute_dtype)
    if M_pad != M:
        x = jnp.pad(x, ((0, M_pad - M), (0, 0)))

    w1 = params["dense_w"].astype(compute_dtype)               # [H, H]  (x @ w1)
    b1 = params["dense_b"].reshape(1, H).astype(jnp.float32)
    gamma = params["ln_gamma"].reshape(1, H).astype(jnp.float32)
    beta = params["ln_beta"].reshape(1, H).astype(jnp.float32)

    w2 = params["decoder_w"].astype(compute_dtype)              # [H, V]
    b2 = params["decoder_b"].reshape(1, V).astype(jnp.float32)
    if V_pad != V:
        w2 = jnp.pad(w2, ((0, 0), (0, V_pad - V)))
        b2 = jnp.pad(b2, ((0, 0), (0, V_pad - V)))

    # ---- Pass 1: transform (dense + GELU + LayerNorm), bf16 h to HBM -------
    h = pl.pallas_call(
        functools.partial(transform_kernel, eps=eps),
        out_shape=jax.ShapeDtypeStruct((M_pad, H), compute_dtype),
        grid_spec=pltpu.PrefetchScalarGridSpec(
            num_scalar_prefetch=0,
            grid=(M_pad // tile_m,),
            in_specs=[
                pl.BlockSpec((tile_m, H), lambda i: (i, 0)),   # x row-tile (bf16)
                pl.BlockSpec((H, H), lambda i: (0, 0)),        # dense W (resident, bf16)
                pl.BlockSpec((1, H), lambda i: (0, 0)),        # dense b (f32)
                pl.BlockSpec((1, H), lambda i: (0, 0)),        # LN gamma (f32)
                pl.BlockSpec((1, H), lambda i: (0, 0)),        # LN beta  (f32)
            ],
            out_specs=pl.BlockSpec((tile_m, H), lambda i: (i, 0)),
        ),
        compiler_params=pltpu.CompilerParams(
            dimension_semantics=("parallel",),
            vmem_limit_bytes=vmem_limit_bytes,
        ),
    )(x, w1, b1, gamma, beta)

    # ---- Pass 2: decoder. Vocab axis OUTER, row axis INNER so each W2 tile
    # is DMA'd from HBM exactly once; h (bf16, small) is the re-read stream. --
    out = pl.pallas_call(
        decoder_kernel,
        out_shape=jax.ShapeDtypeStruct((M_pad, V_pad), out_dtype),
        grid_spec=pltpu.PrefetchScalarGridSpec(
            num_scalar_prefetch=0,
            grid=(V_pad // tile_v, M_pad // tile_m),
            in_specs=[
                pl.BlockSpec((tile_m, H), lambda j, i: (i, 0)),     # h row-tile (bf16)
                pl.BlockSpec((H, tile_v), lambda j, i: (0, j)),     # W2 tile (bf16, outer-only)
                pl.BlockSpec((1, tile_v), lambda j, i: (0, j)),     # decoder bias tile (f32)
            ],
            out_specs=pl.BlockSpec((tile_m, tile_v), lambda j, i: (i, j)),
        ),
        compiler_params=pltpu.CompilerParams(
            dimension_semantics=("parallel", "parallel"),
            vmem_limit_bytes=vmem_limit_bytes,
        ),
    )(h, w2, b2)

    out = out[:M, :V]
    return out.reshape(B, S, V)


def init_params(key, hidden_size, vocab_size):
    k1, k2, k3, k4 = jax.random.split(key, 4)
    scale = 0.02
    return {
        "dense_w": scale * jax.random.normal(k1, (hidden_size, hidden_size), jnp.float32),
        "dense_b": scale * jax.random.normal(k2, (hidden_size,), jnp.float32),
        "ln_gamma": jnp.ones((hidden_size,), jnp.float32),
        "ln_beta": jnp.zeros((hidden_size,), jnp.float32),
        "decoder_w": scale * jax.random.normal(k3, (hidden_size, vocab_size), jnp.float32),
        "decoder_b": scale * jax.random.normal(k4, (vocab_size,), jnp.float32),
    }


def _reference(x, p, eps=1e-12):
    h = x @ p["dense_w"] + p["dense_b"]
    h = jax.nn.gelu(h, approximate=False)
    mean = h.mean(-1, keepdims=True)
    var = ((h - mean) ** 2).mean(-1, keepdims=True)
    h = (h - mean) / jnp.sqrt(var + eps)
    h = h * p["ln_gamma"] + p["ln_beta"]
    return h @ p["decoder_w"] + p["decoder_b"]


if __name__ == "__main__":
    # Small BERT-like config; vocab intentionally NOT a multiple of 128 to
    # exercise the padding path (like the real 30522 vocab).
    B, S, H, V = 2, 8, 128, 500
    key = jax.random.PRNGKey(0)
    kx, kp = jax.random.split(key)
    sequence_output = jax.random.normal(kx, (B, S, H), jnp.float32)
    params = init_params(kp, H, V)

    scores = bert_only_mlm_head(sequence_output, params)
    scores = jax.block_until_ready(scores)

    ref = _reference(sequence_output, params)
    assert scores.shape == (B, S, V)
    # bf16 transform/decoder operands (f32 accumulation) -> loosened tolerance.
    assert jnp.allclose(scores, ref, atol=2e-2, rtol=2e-2), (
        float(jnp.max(jnp.abs(scores - ref))))
    print("KERNEL_OK")
</pallas_src>

<mosaic_0001>
module attributes {stable_mosaic.version = 11 : i64} {
  func.func @transform_kernel(%arg0: i32, %arg1: memref<16x128xbf16, #tpu.memory_space<vmem>>, %arg2: memref<128x128xbf16, #tpu.memory_space<vmem>>, %arg3: memref<1x128xf32, #tpu.memory_space<vmem>>, %arg4: memref<1x128xf32, #tpu.memory_space<vmem>>, %arg5: memref<1x128xf32, #tpu.memory_space<vmem>>, %arg6: memref<16x128xbf16, #tpu.memory_space<vmem>>) attributes {dimension_semantics = [#tpu.dimension_semantics<parallel>], iteration_bounds = array<i64: 1>, scalar_prefetch = 0 : i64, scratch_operands = 0 : i64, tpu.core_type = #tpu.core_type<tc>, window_params = [{transform_indices = @transform_0, window_bounds = array<i64: 16, 128>}, {pipeline_mode = #tpu.pipeline_mode<synchronous>, transform_indices = @transform_1, window_bounds = array<i64: 128, 128>}, {pipeline_mode = #tpu.pipeline_mode<synchronous>, transform_indices = @transform_2, window_bounds = array<i64: 1, 128>}, {pipeline_mode = #tpu.pipeline_mode<synchronous>, transform_indices = @transform_3, window_bounds = array<i64: 1, 128>}, {pipeline_mode = #tpu.pipeline_mode<synchronous>, transform_indices = @transform_4, window_bounds = array<i64: 1, 128>}, {transform_indices = @transform_5, window_bounds = array<i64: 16, 128>}]} {
    %c0 = arith.constant 0 : index
    %c0_0 = arith.constant 0 : index
    %0 = vector.load %arg1[%c0, %c0_0] : memref<16x128xbf16, #tpu.memory_space<vmem>>, vector<16x128xbf16>
    %c0_1 = arith.constant 0 : index
    %c0_2 = arith.constant 0 : index
    %1 = vector.load %arg2[%c0_1, %c0_2] : memref<128x128xbf16, #tpu.memory_space<vmem>>, vector<128x128xbf16>
    %cst = arith.constant dense<0.000000e+00> : vector<16x128xf32>
    %2 = tpu.matmul %0, %1, %cst {dimension_numbers = #tpu.dot_dimension_numbers<[1], [0], [0], [1], [0, 0, 1, 1], [], []>} : vector<16x128xbf16>, vector<128x128xbf16>, vector<16x128xf32> -> vector<16x128xf32>
    %c0_3 = arith.constant 0 : index
    %c0_4 = arith.constant 0 : index
    %3 = vector.load %arg3[%c0_3, %c0_4] : memref<1x128xf32, #tpu.memory_space<vmem>>, vector<1x128xf32>
    %4 = vector.broadcast %3 : vector<1x128xf32> to vector<16x128xf32>
    %5 = arith.addf %2, %4 : vector<16x128xf32>
    %cst_5 = arith.constant 5.000000e-01 : f32
    %6 = vector.broadcast %cst_5 : f32 to vector<16x128xf32>
    %7 = arith.mulf %6, %5 : vector<16x128xf32>
    %cst_6 = arith.constant 0.707106769 : f32
    %8 = vector.broadcast %cst_6 : f32 to vector<16x128xf32>
    %9 = arith.mulf %5, %8 : vector<16x128xf32>
    %10 = math.erf %9 : vector<16x128xf32>
    %cst_7 = arith.constant 1.000000e+00 : f32
    %11 = vector.broadcast %cst_7 : f32 to vector<16x128xf32>
    %12 = arith.addf %11, %10 : vector<16x128xf32>
    %13 = arith.mulf %7, %12 : vector<16x128xf32>
    %cst_8 = arith.constant dense<0.000000e+00> : vector<16xf32>
    %14 = vector.multi_reduction <add>, %13, %cst_8 [1] : vector<16x128xf32> to vector<16xf32>
    %15 = vector.shape_cast %14 : vector<16xf32> to vector<16x1xf32>
    %cst_9 = arith.constant 1.280000e+02 : f32
    %16 = vector.broadcast %cst_9 : f32 to vector<16x1xf32>
    %17 = arith.divf %15, %16 : vector<16x1xf32>
    %18 = vector.broadcast %17 : vector<16x1xf32> to vector<16x128xf32>
    %19 = arith.subf %13, %18 : vector<16x128xf32>
    %20 = arith.mulf %19, %19 : vector<16x128xf32>
    %cst_10 = arith.constant dense<0.000000e+00> : vector<16xf32>
    %21 = vector.multi_reduction <add>, %20, %cst_10 [1] : vector<16x128xf32> to vector<16xf32>
    %22 = vector.shape_cast %21 : vector<16xf32> to vector<16x1xf32>
    %cst_11 = arith.constant 1.280000e+02 : f32
    %23 = vector.broadcast %cst_11 : f32 to vector<16x1xf32>
    %24 = arith.divf %22, %23 : vector<16x1xf32>
    %25 = vector.broadcast %17 : vector<16x1xf32> to vector<16x128xf32>
    %26 = arith.subf %13, %25 : vector<16x128xf32>
    %cst_12 = arith.constant 9.99999996E-13 : f32
    %27 = vector.broadcast %cst_12 : f32 to vector<16x1xf32>
    %28 = arith.addf %24, %27 : vector<16x1xf32>
    %29 = math.rsqrt %28 : vector<16x1xf32>
    %30 = vector.broadcast %29 : vector<16x1xf32> to vector<16x128xf32>
    %31 = arith.mulf %26, %30 : vector<16x128xf32>
    %c0_13 = arith.constant 0 : index
    %c0_14 = arith.constant 0 : index
    %32 = vector.load %arg4[%c0_13, %c0_14] : memref<1x128xf32, #tpu.memory_space<vmem>>, vector<1x128xf32>
    %33 = vector.broadcast %32 : vector<1x128xf32> to vector<16x128xf32>
    %34 = arith.mulf %31, %33 : vector<16x128xf32>
    %c0_15 = arith.constant 0 : index
    %c0_16 = arith.constant 0 : index
    %35 = vector.load %arg5[%c0_15, %c0_16] : memref<1x128xf32, #tpu.memory_space<vmem>>, vector<1x128xf32>
    %36 = vector.broadcast %35 : vector<1x128xf32> to vector<16x128xf32>
    %37 = arith.addf %34, %36 : vector<16x128xf32>
    %38 = arith.truncf %37 : vector<16x128xf32> to vector<16x128xbf16>
    %c0_17 = arith.constant 0 : index
    %c0_18 = arith.constant 0 : index
    %39 = vector.load %arg6[%c0_17, %c0_18] : memref<16x128xbf16, #tpu.memory_space<vmem>>, vector<16x128xbf16>
    tpu.vector_store %arg6[%c0_17, %c0_18], %38 {strides = array<i32>} : memref<16x128xbf16, #tpu.memory_space<vmem>>, vector<16x128xbf16>,
    return
  }
  func.func @transform_0(%arg0: i32) -> (i32, i32) {
    %c0_i32 = arith.constant 0 : i32
    %c0_i32_0 = arith.constant 0 : i32
    return %arg0, %c0_i32 : i32, i32
  }
  func.func @transform_1(%arg0: i32) -> (i32, i32) {
    %c0_i32 = arith.constant 0 : i32
    %c0_i32_0 = arith.constant 0 : i32
    %c0_i32_1 = arith.constant 0 : i32
    return %c0_i32, %c0_i32_0 : i32, i32
  }
  func.func @transform_2(%arg0: i32) -> (i32, i32) {
    %c0_i32 = arith.constant 0 : i32
    %c0_i32_0 = arith.constant 0 : i32
    %c0_i32_1 = arith.constant 0 : i32
    return %c0_i32, %c0_i32_0 : i32, i32
  }
  func.func @transform_3(%arg0: i32) -> (i32, i32) {
    %c0_i32 = arith.constant 0 : i32
    %c0_i32_0 = arith.constant 0 : i32
    %c0_i32_1 = arith.constant 0 : i32
    return %c0_i32, %c0_i32_0 : i32, i32
  }
  func.func @transform_4(%arg0: i32) -> (i32, i32) {
    %c0_i32 = arith.constant 0 : i32
    %c0_i32_0 = arith.constant 0 : i32
    %c0_i32_1 = arith.constant 0 : i32
    return %c0_i32, %c0_i32_0 : i32, i32
  }
  func.func @transform_5(%arg0: i32) -> (i32, i32) {
    %c0_i32 = arith.constant 0 : i32
    %c0_i32_0 = arith.constant 0 : i32
    return %arg0, %c0_i32 : i32, i32
  }
}

</mosaic_0001>

<bundles_post_ra>
// kernel: tpu_custom_call.1
= control target key start
LH: loop header
LB: loop body
LE: loop exit
PB: predicated region body
PF: predicated region fallthrough
CT: control target
= control target key end

     0   :  { %10 = vsyncpa [#allocation3], 0  ;;  %s486_s0 = inlined_call_operand.hbm [shape: bf16[16,128], index: 0, kind: input, shape index: {}]   ;;  %s487_s1 = inlined_call_operand.hbm [shape: bf16[128,128], index: 1, kind: input, shape index: {}]   ;;  %s488_s2 = inlined_call_operand.vmem [shape: f32[1,128], index: 2, kind: input, shape index: {}]   ;;  %s489_s3 = inlined_call_operand.vmem [shape: f32[1,128], index: 3, kind: input, shape index: {}]   ;;  %s490_s4 = inlined_call_operand.vmem [shape: f32[1,128], index: 4, kind: input, shape index: {}]   ;;  %s491_s5 = inlined_call_operand.hbm [shape: bf16[16,128], index: 5, kind: output, shape index: {}]  }
   0x1   :  { %11 = vsyncpa [#allocation6], 0 }
   0x2   :  { %12 = vsyncpa [#allocation4], 0  ;;  %s395_s18 = smov [#allocation2]   ;;  %s323_s22 = scalar_lea.hbm %s486_s0, 128 }
   0x3   :  { %s18_s19 = sshll.u32 %s395_s18, 4  ;;  %p324_p0 = scmp.ne.s32.totalorder %s486_s0, %s323_s22  ;;  %s19_s19 = int_to_ptr.vmem [resolvable:$true] %s18_s19 }
   0x4   :  { %p327_p1 = scmp.lt.u32.totalorder %s323_s22, %s486_s0 }
   0x6   :  { %p329_p2 = pnand %p327_p1, %p324_p0 }
   0x8   :  { %332 = shalt.err (!%p329_p2)
}
   0x9   :  { %s333_s27 = scalar_lea.vmem %s19_s19, 128  ;;  %p338_p4 = scmp.lt.s32.totalorder %s19_s19, %s19_s19 }
   0xa   :  { %p334_p3 = scmp.ne.s32.totalorder %s19_s19, %s333_s27  ;;  %p339_p5 = scmp.lt.s32.totalorder %s333_s27, %s333_s27 }
   0xc   :  { %p340_p6 = por %p339_p5, %p338_p4 }
   0xe   :  { %p341_p7 = pnand %p340_p6, %p334_p3 }
  0x10   :  { %344 = shalt.err (!%p341_p7)
}
  0x11   :  { %s396_s28 = smov 64   ;;  %s397_s29 = smov 4  }
  0x12   :  { %24 = dma.hbm_to_vmem [thread:$0]  %s486_s0, 128, %s19_s19, [#allocation3], %s396_s28, %s396_s28, %s397_s29  }
  0x13   :  { %s398_s7 = smov [#allocation5]   ;;  %s345_s11 = scalar_lea.hbm %s487_s1, 1024 }
  0x14   :  { %s30_s8 = sshll.u32 %s398_s7, 4  ;;  %p346_p8 = scmp.ne.s32.totalorder %s487_s1, %s345_s11  ;;  %s31_s8 = int_to_ptr.vmem [resolvable:$true] %s30_s8 }
  0x15   :  { %p349_p9 = scmp.lt.u32.totalorder %s345_s11, %s487_s1 }
  0x17   :  { %p351_p10 = pnand %p349_p9, %p346_p8 }
  0x19   :  { %354 = shalt.err (!%p351_p10)
}
  0x1a   :  { %s355_s16 = scalar_lea.vmem %s31_s8, 1024  ;;  %p360_p12 = scmp.lt.s32.totalorder %s31_s8, %s31_s8 }
  0x1b   :  { %p356_p11 = scmp.ne.s32.totalorder %s31_s8, %s355_s16  ;;  %p361_p13 = scmp.lt.s32.totalorder %s355_s16, %s355_s16 }
  0x1d   :  { %p362_p0 = por %p361_p13, %p360_p12 }
  0x1f   :  { %p363_p1 = pnand %p362_p0, %p356_p11 }
  0x21   :  { %366 = shalt.err (!%p363_p1)
}
  0x22   :  { %36 = dma.hbm_to_vmem [thread:$0]  %s487_s1, 1024, %s31_s8, [#allocation6], %s396_s28, %s396_s28, %s397_s29  }
  0x23   :  { %389 = dma.done.wait [#allocation3], 128  }
  0x24   :  { %390 = vsyncadd [#allocation3], 4294967168 }
  0x25   :  { %391 = dma.done.wait [#allocation6], 1024  }
  0x26   :  { %392 = vsyncadd [#allocation6], 4294966272  ;;  %v399_v0 = vmov 0.0   ;;  %vm400_vm0 = vmmov 0   ;;  %v306_v1 = vld [vmem:[#allocation5] sm:$0xff]   ;;  %v307_v2 = vld [vmem:[#allocation5 + $0x8] sm:$0xff]  }
  0x27   :  { %279 = vmatprep.subr.bf16.mxu0 %v399_v0  ;;  %295 = vmatprep.mubr.msk.bf16.mxu0 %vm400_vm0, %v399_v0  ;;  %v308_v3 = vld [vmem:[#allocation5 + $0x10] sm:$0xff]   ;;  %v309_v4 = vld [vmem:[#allocation5 + $0x18] sm:$0xff]   ;;  %v310_v5 = vld [vmem:[#allocation5 + $0x20] sm:$0xff]   ;;  %s401_s22 = smov [#allocation7]  }
  0x28   :  { %280 = vmatpush3.bf16.msra.mxu0 %v306_v1  ;;  %v311_v6 = vld [vmem:[#allocation5 + $0x28] sm:$0xff]   ;;  %v312_v7 = vld [vmem:[#allocation5 + $0x30] sm:$0xff]   ;;  %v313_v8 = vld [vmem:[#allocation5 + $0x38] sm:$0xff]   ;;  %s236_s23 = sshll.u32 %s401_s22, 4  ;;  %s237_s23 = int_to_ptr.vmem [resolvable:$true] %s236_s23 }
  0x29   :  { %281 = vmatprep.subr.bf16.mxu0 %v399_v0  ;;  %v314_v9 = vld [vmem:[#allocation2] sm:$0xff]   ;;  %s367_s24 = scalar_lea.vmem %s237_s23, 128  ;;  %p372_p3 = scmp.lt.s32.totalorder %s237_s23, %s237_s23 }
  0x2a   :  { %v249_v10 = vld [vmem:[%s488_s2] ss:$0 sm:$0xff]  ;;  %p368_p2 = scmp.ne.s32.totalorder %s237_s23, %s367_s24  ;;  %p373_p4 = scmp.lt.s32.totalorder %s367_s24, %s367_s24 }
  0x2b   :  { %v259_v43 = vld [vmem:[%s489_s3] ss:$0 sm:$0xff] }
  0x2c   :  { %282 = vmatpush3.bf16.msra.mxu0 %v307_v2  ;;  %v260_v47 = vld [vmem:[%s490_s4] ss:$0 sm:$0xff]  ;;  %p374_p5 = por %p373_p4, %p372_p3 }
  0x2d   :  { %283 = vmatprep.subr.bf16.mxu0 %v399_v0 }
  0x2e   :  { %p375_p6 = pnand %p374_p5, %p368_p2 }
  0x30   :  { %284 = vmatpush3.bf16.msra.mxu0 %v308_v3 }
  0x31   :  { %285 = vmatprep.subr.bf16.mxu0 %v399_v0 }
  0x34   :  { %286 = vmatpush3.bf16.msra.mxu0 %v309_v4 }
  0x35   :  { %287 = vmatprep.subr.bf16.mxu0 %v399_v0 }
  0x38   :  { %288 = vmatpush3.bf16.msra.mxu0 %v310_v5 }
  0x39   :  { %289 = vmatprep.subr.bf16.mxu0 %v399_v0 }
  0x3c   :  { %290 = vmatpush3.bf16.msra.mxu0 %v311_v6 }
  0x3d   :  { %291 = vmatprep.subr.bf16.mxu0 %v399_v0 }
  0x40   :  { %292 = vmatpush3.bf16.msra.mxu0 %v312_v7 }
  0x41   :  { %293 = vmatprep.subr.bf16.mxu0 %v399_v0 }
  0x44   :  { %294 = vmatpush3.bf16.msra.mxu0 %v313_v8 }
  0x47   :  { %296 = vmatmul.mubr.bf16.vlgmr.msra.gmra.mrb[0].mxu0 %v314_v9 }
 0x11a   :  { %v163_v11 = vpop.f32.mrb[0].mxu0 }
 0x11b   :  { %v164_v12 = vadd.f32 %v249_v10, %v163_v11  ;;  %v297_v13 = vpop.f32.mrb[1].mxu0 }
 0x11c   :  { %v166_v14 = vpop.f32.mrb[2].mxu0 }
 0x11d   :  { %v172_v15 = vmul.f32 0.70710677, %v164_v12  ;;  %v167_v16 = vadd.f32 %v249_v10, %v166_v14  ;;  %v298_v17 = vpop.f32.mrb[3].mxu0  ;;  %v170_v20 = vmul.f32 0.5, %v164_v12 }
 0x11f   :  { %315 = verf.f32 %v172_v15  ;;  %v173_v18 = vmul.f32 0.70710677, %v167_v16  ;;  %v171_v25 = vmul.f32 0.5, %v167_v16 }
 0x121   :  { %317 = verf.f32 %v173_v18 }
 0x129   :  { %v316_v19 = vpop.eup %315 }
 0x12a   :  { %v176_v21 = vadd.f32 1.0, %v316_v19 }
 0x12b   :  { %v318_v22 = vpop.eup %317 }
 0x12c   :  { %v178_v23 = vmul.f32 %v176_v21, %v170_v20  ;;  %v177_v24 = vadd.f32 1.0, %v318_v22 }
 0x12e   :  { %180 = vadd.xlane.f32.xlu0 %v178_v23  ;;  %v179_v26 = vmul.f32 %v177_v24, %v171_v25 }
 0x132   :  { %182 = vadd.xlane.f32.xlu0 %v179_v26 }
 0x1bb   :  { %v181_v27 = vpop.xlane.xlu0 %180 }
 0x1bc   :  { %v185_v28 = vmul.f32 0.0078125, %v181_v27 }
 0x1be   :  { %v187_v29 = vsub.f32 %v178_v23, %v185_v28 }
 0x1bf   :  { %v183_v30 = vpop.xlane.xlu0 %182 }
 0x1c0   :  { %v186_v31 = vmul.f32 0.0078125, %v183_v30  ;;  %v189_v32 = vmul.f32 %v187_v29, %v187_v29 }
 0x1c2   :  { %v188_v33 = vsub.f32 %v179_v26, %v186_v31  ;;  %191 = vadd.xlane.f32.xlu1 %v189_v32 }
 0x1c4   :  { %v190_v34 = vmul.f32 %v188_v33, %v188_v33 }
 0x1c6   :  { %193 = vadd.xlane.f32.xlu1 %v190_v34 }
 0x24f   :  { %v192_v35 = vpop.xlane.xlu1 %191 }
 0x250   :  { %v195_v36 = vmul.f32 0.0078125, %v192_v35 }
 0x252   :  { %v197_v37 = vadd.f32 1e-12, %v195_v36 }
 0x253   :  { %v194_v38 = vpop.xlane.xlu1 %193 }
 0x254   :  { %319 = vrsqrt.f32 %v197_v37  ;;  %v196_v39 = vmul.f32 0.0078125, %v194_v38 }
 0x256   :  { %v198_v40 = vadd.f32 1e-12, %v196_v39 }
 0x258   :  { %321 = vrsqrt.f32 %v198_v40 }
 0x25e   :  { %v320_v41 = vpop.eup %319 }
 0x25f   :  { %v201_v42 = vmul.f32 %v320_v41, %v187_v29 }
 0x261   :  { %v210_v46 = vmul.f32 %v259_v43, %v201_v42 }
 0x262   :  { %v322_v44 = vpop.eup %321 }
 0x263   :  { %v202_v45 = vmul.f32 %v322_v44, %v188_v33  ;;  %v219_v49 = vadd.f32 %v260_v47, %v210_v46 }
 0x265   :  { %v211_v48 = vmul.f32 %v259_v43, %v202_v45 }
 0x267   :  { %v220_v50 = vadd.f32 %v260_v47, %v211_v48 }
 0x269   :  { %v268_v51 = vpack.c.bf16 %v220_v50, %v219_v49 }
 0x26b   :  { %269 = vst [vmem:[#allocation7] sm:$0xff] %v268_v51  }
 0x26c   :  { %378 = shalt.err (!%p375_p6)
}
 0x26d   :  { %s379_s26 = scalar_lea.hbm %s491_s5, 128 }
 0x26e   :  { %p380_p7 = scmp.ne.s32.totalorder %s491_s5, %s379_s26  ;;  %p383_p8 = scmp.lt.u32.totalorder %s379_s26, %s491_s5 }
 0x270   :  { %p385_p9 = pnand %p383_p8, %p380_p7 }
 0x272   :  { %388 = shalt.err (!%p385_p9)
}
 0x273   :  { %242 = dma.vmem_to_hbm [thread:$0]  %s237_s23, 128, %s491_s5, [#allocation4], %s396_s28, %s396_s28, %s397_s29  }
 0x274   :  { %393 = dma.done.wait [#allocation4], 128  }
 0x275   :  { %394 = vsyncadd [#allocation4], 4294967168 }
 0x276   :  { %246 = vsyncpa [#allocation3], 1 }
 0x277   :  { %247 = vsyncpa [#allocation6], 1 }
 0x278   :  { %248 = vsyncpa [#allocation4], 1 }

</bundles_post_ra>
